<compile_context>
chip_gen: v5e
topology: v5e:2x2
jax: 0.10.0
libtpu: 0.0.40
codegen_flags: <defaults>
</compile_context>

<pallas_src>
import functools
import math

import jax
import jax.numpy as jnp
from jax.experimental import pallas as pl
from jax.experimental.pallas import tpu as pltpu


# --------------------------------------------------------------------------------------
# pe buffer construction (mirrors the PyTorch __init__ exactly, stored 2-D, model dtype)
# --------------------------------------------------------------------------------------
def make_positional_encoding(d_model: int, max_len: int = 3000, dtype=jnp.float32):
    position = jnp.arange(max_len, dtype=jnp.float32)[:, None]                     # (max_len, 1)
    div_term = jnp.exp(
        jnp.arange(0, d_model, 2, dtype=jnp.float32) * (-math.log(10000.0) / d_model)
    )
    div_term_odd = jnp.exp(
        jnp.arange(0, d_model - 1, 2, dtype=jnp.float32) * (-math.log(10000.0) / d_model)
    )
    pe = jnp.zeros((max_len, d_model), dtype=jnp.float32)
    pe = pe.at[:, 0::2].set(jnp.sin(position * div_term))
    pe = pe.at[:, 1::2].set(jnp.cos(position * div_term_odd))
    return pe.astype(dtype)                                                        # (max_len, D)


# --------------------------------------------------------------------------------------
# Kernels
# --------------------------------------------------------------------------------------
def _pe_add3d_kernel(x_ref, pe_ref, o_ref):
    # x_ref/o_ref: (ts, B, D) with D lane-dense, B sublane-pack-aligned; pe_ref: (ts, D).
    # Broadcast pe over the batch (sublane) axis on the VPU (free under the DMA-bound loop).
    o_ref[...] = x_ref[...] + pe_ref[...][:, None, :]


def _pe_add_flat_tiled_kernel(x_ref, pe_ref, o_ref, *, batch):
    # x_ref/o_ref: (ts, B*D); pe_ref: (ts, D) with D a multiple of 128.
    # Replicate pe across the batch along lanes in-kernel (aligned concat) so pe is only
    # ever read D-wide from HBM — never materialized at batch width in the wrapper.
    o_ref[...] = x_ref[...] + jnp.tile(pe_ref[...], (1, batch))


def _pe_add_flat_kernel(x_ref, pe_ref, o_ref):
    # Fallback flattened path (lane-unaligned toy d_model): all refs are (ts, B*D).
    o_ref[...] = x_ref[...] + pe_ref[...]


# --------------------------------------------------------------------------------------
# Tiling helpers
# --------------------------------------------------------------------------------------
def _sublane_pack(itemsize: int) -> int:
    # Packed-sublane tile height: 8 for f32, 16 for bf16, 32 for int8/fp8.
    return max(8, 32 // itemsize)


def _choose_ts(S: int, row_bytes: int, itemsize: int, target_tile_bytes: int) -> int:
    """Rows per tile: pack-aligned, <= byte budget, >=2 tiles when possible, divides S if it can."""
    pack = _sublane_pack(itemsize)
    if S < 2 * pack:
        return S  # single full-extent tile (layout-legal: block dim == array dim)
    budget = max(pack, (target_tile_bytes // max(row_bytes, 1)) // pack * pack)
    cap = max(pack, min(budget, (S // 2) // pack * pack))   # >= 2 tiles -> both v7x TCs run
    even_div, any_div = None, None
    ts = cap
    while ts >= pack:
        if S % ts == 0:
            if any_div is None:
                any_div = ts
            if (S // ts) % 2 == 0:        # even tile count balances the two v7x cores
                even_div = ts
                break
        ts -= pack
    return even_div or any_div or cap     # ragged last tile is masked by Pallas if no divisor


def _prep_pe(pe, dtype, S: int, ts: int):
    """Avoid touching the full max_len buffer unless the BlockSpec needs a full-extent block."""
    if pe.dtype != dtype:
        return pe[:S].astype(dtype)       # cast only the rows actually read
    if ts == S and S % 8 != 0:
        return pe[:S]                     # single block must equal array rows when S unaligned
    return pe                             # full buffer; index_map windows S rows, zero copies


# --------------------------------------------------------------------------------------
# Wrapper
# --------------------------------------------------------------------------------------
def positional_encoding_forward(x, pe, *, target_tile_bytes: int = 2 * 1024 * 1024):
    """x: [seq_len, batch, d_model]; pe: [max_len, d_model] -> x + pe[:seq_len, None, :]."""
    S, B, D = x.shape
    max_len = pe.shape[0]
    assert S <= max_len, f"seq_len {S} exceeds max_len {max_len}"

    itemsize = jnp.dtype(x.dtype).itemsize
    pack = _sublane_pack(itemsize)
    cparams = pltpu.CompilerParams(dimension_semantics=("parallel",))
    cost = pl.CostEstimate(flops=S * B * D, transcendentals=0,
                           bytes_accessed=(2 * S * B * D + S * D) * itemsize)

    row_bytes = B * D * itemsize
    ts = _choose_ts(S, row_bytes, itemsize, target_tile_bytes)
    grid = (pl.cdiv(S, ts),)

    if D % 128 == 0 and B % pack == 0:
        # ---------------- 3-D lane-dense path (large, pack-aligned batch) ----------------
        pe_in = _prep_pe(pe, x.dtype, S, ts)
        return pl.pallas_call(
            _pe_add3d_kernel,
            out_shape=jax.ShapeDtypeStruct((S, B, D), x.dtype),
            grid=grid,
            in_specs=[pl.BlockSpec((ts, B, D), lambda s: (s, 0, 0)),
                      pl.BlockSpec((ts, D), lambda s: (s, 0))],
            out_specs=pl.BlockSpec((ts, B, D), lambda s: (s, 0, 0)),
            compiler_params=cparams,
            cost_estimate=cost,
            input_output_aliases={0: 0},
        )(x, pe_in)

    # ---------------- flattened (S, B*D) path: small / unaligned batch ----------------
    F = B * D
    x2 = x.reshape(S, F)                  # row-major contiguous -> free bitcast reshape
    if D % 128 == 0:
        # pe stays D-wide in HBM; replicated across batch inside the kernel.
        pe_in = _prep_pe(pe, x.dtype, S, ts)
        kern = functools.partial(_pe_add_flat_tiled_kernel, batch=B)
        pe_spec = pl.BlockSpec((ts, D), lambda s: (s, 0))
    else:
        # Lane-unaligned toy d_model: in-kernel lane replication of a non-128-aligned tile
        # risks relayout cost, and at these sizes the wrapper broadcast is negligible.
        pe_in = jnp.broadcast_to(pe[:S].astype(x.dtype)[:, None, :], (S, B, D)).reshape(S, F)
        kern = _pe_add_flat_kernel
        pe_spec = pl.BlockSpec((ts, F), lambda s: (s, 0))

    out2 = pl.pallas_call(
        kern,
        out_shape=jax.ShapeDtypeStruct((S, F), x.dtype),
        grid=grid,
        in_specs=[pl.BlockSpec((ts, F), lambda s: (s, 0)), pe_spec],
        out_specs=pl.BlockSpec((ts, F), lambda s: (s, 0)),
        compiler_params=cparams,
        cost_estimate=cost,
        input_output_aliases={0: 0},
    )(x2, pe_in)
    return out2.reshape(S, B, D)


# --------------------------------------------------------------------------------------
# Self-test
# --------------------------------------------------------------------------------------
if __name__ == "__main__":
    key = jax.random.PRNGKey(0)
    keys = jax.random.split(key, 4)

    # Case 1: toy module shapes -> flattened fallback path, single full-extent tile.
    S, B, D = 8, 2, 32
    pe = make_positional_encoding(D)
    x = jax.random.normal(keys[0], (S, B, D), dtype=jnp.float32)
    ref = x + pe[:S][:, None, :]
    out = jax.block_until_ready(positional_encoding_forward(x, pe))
    assert out.shape == (S, B, D)
    assert jnp.allclose(out, ref, atol=1e-6), "mismatch (flattened fallback path)"

    # Case 2: lane-dense D, small batch -> flattened path with in-kernel pe lane-tiling,
    # tiny tile budget to force an even multi-step grid (4 tiles of 16 rows).
    S, B, D = 64, 2, 128
    pe = make_positional_encoding(D)
    x = jax.random.normal(keys[1], (S, B, D), dtype=jnp.float32)
    ref = x + pe[:S][:, None, :]
    out = jax.block_until_ready(positional_encoding_forward(x, pe, target_tile_bytes=16 * 1024))
    assert jnp.allclose(out, ref, atol=1e-6), "mismatch (flattened tiled path)"

    # Case 3: batch a multiple of the sublane pack -> 3-D lane-dense path, 2 grid steps.
    S, B, D = 48, 8, 128
    pe = make_positional_encoding(D)
    x = jax.random.normal(keys[2], (S, B, D), dtype=jnp.float32)
    ref = x + pe[:S][:, None, :]
    out = jax.block_until_ready(positional_encoding_forward(x, pe))
    assert jnp.allclose(out, ref, atol=1e-6), "mismatch (3-D path)"

    # Case 4: bf16 x with f32 pe (exercises the pe[:S]-only cast) and a ragged final tile.
    S, B, D = 36, 2, 128
    pe = make_positional_encoding(D)                          # f32 buffer
    x = jax.random.normal(keys[3], (S, B, D), dtype=jnp.float32).astype(jnp.bfloat16)
    ref = x + pe[:S].astype(jnp.bfloat16)[:, None, :]
    out = jax.block_until_ready(positional_encoding_forward(x, pe, target_tile_bytes=4 * 1024))
    assert out.dtype == jnp.bfloat16
    assert jnp.allclose(out.astype(jnp.float32), ref.astype(jnp.float32), atol=1e-2), \
        "mismatch (bf16 ragged-tile path)"

    print("KERNEL_OK")
</pallas_src>

<mosaic_0001>
module attributes {stable_mosaic.version = 11 : i64} {
  func.func @_pe_add_flat_kernel(%arg0: i32, %arg1: memref<8x64xf32, #tpu.memory_space<vmem>>, %arg2: memref<8x64xf32, #tpu.memory_space<vmem>>, %arg3: memref<8x64xf32, #tpu.memory_space<vmem>>) attributes {dimension_semantics = [#tpu.dimension_semantics<parallel>], iteration_bounds = array<i64: 1>, scalar_prefetch = 0 : i64, scratch_operands = 0 : i64, tpu.core_type = #tpu.core_type<tc>, window_params = [{transform_indices = @transform_0, window_bounds = array<i64: 8, 64>}, {transform_indices = @transform_1, window_bounds = array<i64: 8, 64>}, {transform_indices = @transform_2, window_bounds = array<i64: 8, 64>}]} {
    %c0 = arith.constant 0 : index
    %c0_0 = arith.constant 0 : index
    %0 = vector.load %arg1[%c0, %c0_0] : memref<8x64xf32, #tpu.memory_space<vmem>>, vector<8x64xf32>
    %c0_1 = arith.constant 0 : index
    %c0_2 = arith.constant 0 : index
    %1 = vector.load %arg2[%c0_1, %c0_2] : memref<8x64xf32, #tpu.memory_space<vmem>>, vector<8x64xf32>
    %2 = arith.addf %0, %1 : vector<8x64xf32>
    %c0_3 = arith.constant 0 : index
    %c0_4 = arith.constant 0 : index
    %3 = vector.load %arg3[%c0_3, %c0_4] : memref<8x64xf32, #tpu.memory_space<vmem>>, vector<8x64xf32>
    tpu.vector_store %arg3[%c0_3, %c0_4], %2 {strides = array<i32>} : memref<8x64xf32, #tpu.memory_space<vmem>>, vector<8x64xf32>,
    return
  }
  func.func @transform_0(%arg0: i32) -> (i32, i32) {
    %c0_i32 = arith.constant 0 : i32
    %c0_i32_0 = arith.constant 0 : i32
    return %arg0, %c0_i32 : i32, i32
  }
  func.func @transform_1(%arg0: i32) -> (i32, i32) {
    %c0_i32 = arith.constant 0 : i32
    %c0_i32_0 = arith.constant 0 : i32
    return %arg0, %c0_i32 : i32, i32
  }
  func.func @transform_2(%arg0: i32) -> (i32, i32) {
    %c0_i32 = arith.constant 0 : i32
    %c0_i32_0 = arith.constant 0 : i32
    return %arg0, %c0_i32 : i32, i32
  }
}

</mosaic_0001>

<bundles_post_ra>
// kernel: tpu_custom_call.1
= control target key start
LH: loop header
LB: loop body
LE: loop exit
PB: predicated region body
PF: predicated region fallthrough
CT: control target
= control target key end

     0   :  { %7 = vsyncpa [#allocation3], 0  ;;  %s128_s0 = inlined_call_operand.hbm [shape: f32[8,64], index: 0, kind: input, shape index: {}, may-alias: {0,2}]   ;;  %s129_s1 = inlined_call_operand.vmem [shape: f32[8,64], index: 1, kind: input, shape index: {}]   ;;  %s130_s2 = inlined_call_operand.hbm [shape: f32[8,64], index: 2, kind: output, shape index: {}, may-alias: {0,2}]  }
   0x1   :  { %8 = vsyncpa [#allocation4], 0  ;;  %s14_s11 = sshll.u32 %s128_s0, 4  ;;  %s102_s12 = smov [#allocation2]   ;;  %s15_s11 = int_to_ptr.hbm [resolvable:$true] %s14_s11 }
   0x2   :  { %s16_s13 = sshll.u32 %s102_s12, 4  ;;  %s17_s13 = int_to_ptr.vmem [resolvable:$true] %s16_s13 }
   0x3   :  { %19 = dma.hbm_to_vmem [thread:$0]  %s15_s11, 128, %s17_s13, [#allocation3]  }
   0x4   :  { %98 = dma.done.wait [#allocation3], 128  }
   0x5   :  { %99 = vsyncadd [#allocation3], 4294967168  ;;  %s103_s14 = smov [#allocation5]   ;;  %s38_s18 = sshll.u32 %s130_s2, 4  ;;  %v26_v0 = vld [vmem:[#allocation2] sm:$0xff]  ;;  %vm29_vm0 = vcmask 523264   ;;  %s39_s18 = int_to_ptr.hbm [resolvable:$true] %s38_s18 }
   0x6   :  { %s36_s15 = sshll.u32 %s103_s14, 4  ;;  %v27_v1 = vld [vmem:[%s129_s1] sm:$0xff]  ;;  %s37_s15 = int_to_ptr.vmem [resolvable:$true] %s36_s15 }
   0x7   :  { %v28_v2 = vadd.f32 %v27_v1, %v26_v0 }
   0x9   :  { %30 = vst.msk [vmem:[#allocation5] sm:$0xff] %vm29_vm0, %v28_v2 }
   0xa   :  { %41 = dma.vmem_to_hbm [thread:$0]  %s37_s15, 128, %s39_s18, [#allocation4]  }
   0xb   :  { %100 = dma.done.wait [#allocation4], 128  }
   0xc   :  { %101 = vsyncadd [#allocation4], 4294967168 }
   0xd   :  { %46 = vsyncpa [#allocation3], 1 }
   0xe   :  { %47 = vsyncpa [#allocation4], 1 }

</bundles_post_ra>
